<compile_context>
chip_gen: v5e
topology: v5e:2x2
jax: 0.10.0
libtpu: 0.0.40
codegen_flags: <defaults>
</compile_context>

<pallas_src>
import jax
import jax.numpy as jnp
from jax import lax
from jax.experimental import pallas as pl
from jax.experimental.pallas import tpu as pltpu


def _log_sigmoid(x):
    # Numerically stable log(sigmoid(x)) = min(x, 0) - log1p(exp(-|x|)).
    return jnp.minimum(x, 0.0) - jnp.log1p(jnp.exp(-jnp.abs(x)))


def _make_kernel(batch, block_b):
    """Kernel closure over the true batch size and the B tile size."""

    def kernel(in_ref, out_ref, neg_ref, loss_ref, acc_ref):
        i = pl.program_id(0)

        @pl.when(i == 0)
        def _init():
            acc_ref[...] = jnp.zeros_like(acc_ref)

        iv = in_ref[...].astype(jnp.float32)    # (TB, D)
        ov = out_ref[...].astype(jnp.float32)   # (TB, D)
        nv = neg_ref[...].astype(jnp.float32)   # (TB, N, D)

        # Positive term: per-row dot product (VPU mul + XLU lane reduce).
        pos_score = jnp.sum(ov * iv, axis=-1, keepdims=True)            # (TB, 1)
        pos_ls = _log_sigmoid(pos_score)                                 # (TB, 1)

        # Negative term: per-row, per-sample dot products.
        neg_score = -jnp.sum(nv * iv[:, None, :], axis=-1)               # (TB, N)
        neg_ls = jnp.sum(_log_sigmoid(neg_score), axis=-1, keepdims=True)  # (TB, 1)

        per_row = pos_ls + neg_ls                                        # (TB, 1)

        # Mask off zero-padded rows of the (possibly ragged) last tile.
        row_ids = i * block_b + lax.broadcasted_iota(jnp.int32, (block_b, 1), 0)
        per_row = jnp.where(row_ids < batch, per_row, 0.0)

        acc_ref[...] += jnp.sum(per_row, keepdims=True)                  # (1, 1)

        @pl.when(i == pl.num_programs(0) - 1)
        def _finalize():
            loss_ref[...] = -acc_ref[...] / jnp.float32(batch)

    return kernel


def negative_sampling_loss(input_vectors, output_vectors, neg_vectors,
                           *, block_b=None, vmem_limit_bytes=32 * 1024 * 1024):
    B, D = input_vectors.shape
    Bn, N, Dn = neg_vectors.shape
    assert output_vectors.shape == (B, D) and Bn == B and Dn == D

    itemsize = jnp.dtype(input_vectors.dtype).itemsize
    # Sublane packing granularity: f32 -> 8, bf16 -> 16, int8/fp8 -> 32.
    sub = max(8, 32 // itemsize)

    if block_b is None:
        # Size the B tile so one tile-set (input + output + negs) is ~8 MiB;
        # double-buffered that is ~16 MiB -> safe on v5e/v6e/v7x scoped VMEM.
        bytes_per_row = (2 + N) * D * itemsize
        block_b = (8 * 1024 * 1024) // max(bytes_per_row, 1)
    block_b = int(max(sub, min(2048, int(block_b))))
    block_b = (block_b // sub) * sub
    block_b = min(block_b, -(-B // sub) * sub)   # don't exceed the padded batch

    # Pad the batch so the grid divides evenly; padded rows are masked in-kernel.
    b_pad = -(-B // block_b) * block_b
    if b_pad != B:
        pad = b_pad - B
        input_vectors = jnp.pad(input_vectors, ((0, pad), (0, 0)))
        output_vectors = jnp.pad(output_vectors, ((0, pad), (0, 0)))
        neg_vectors = jnp.pad(neg_vectors, ((0, pad), (0, 0), (0, 0)))

    grid = (b_pad // block_b,)
    kernel = _make_kernel(B, block_b)

    out = pl.pallas_call(
        kernel,
        out_shape=jax.ShapeDtypeStruct((1, 1), jnp.float32),
        grid_spec=pltpu.PrefetchScalarGridSpec(
            num_scalar_prefetch=0,
            grid=grid,
            in_specs=[
                pl.BlockSpec((block_b, D), lambda i: (i, 0)),
                pl.BlockSpec((block_b, D), lambda i: (i, 0)),
                pl.BlockSpec((block_b, N, D), lambda i: (i, 0, 0)),
            ],
            out_specs=pl.BlockSpec((1, 1), lambda i: (0, 0)),
            scratch_shapes=[pltpu.VMEM((1, 1), jnp.float32)],
        ),
        compiler_params=pltpu.CompilerParams(
            # Reduction over the batch axis into a resident accumulator.
            dimension_semantics=("arbitrary",),
            vmem_limit_bytes=vmem_limit_bytes,
        ),
    )(input_vectors, output_vectors, neg_vectors)
    return out[0, 0]


def negative_sampling_loss_ref(input_vectors, output_vectors, neg_vectors):
    """Pure-JAX reference mirroring the PyTorch forward literally."""
    iv = input_vectors.astype(jnp.float32)
    ov = output_vectors.astype(jnp.float32)
    nv = neg_vectors.astype(jnp.float32)
    pos = jnp.sum(ov * iv, axis=-1)
    out_loss = jnp.log(jax.nn.sigmoid(pos))
    neg = -jnp.einsum("bnd,bd->bn", nv, iv)
    neg_loss = jnp.sum(jnp.log(jax.nn.sigmoid(neg)), axis=1)
    return -jnp.mean(out_loss + neg_loss)


if __name__ == "__main__":
    key = jax.random.PRNGKey(0)
    k1, k2, k3 = jax.random.split(key, 3)

    B, D, N = 8, 32, 5  # batch, embed_dim, num negative samples
    input_vectors = jax.random.normal(k1, (B, D), dtype=jnp.float32)
    output_vectors = jax.random.normal(k2, (B, D), dtype=jnp.float32)
    neg_vectors = jax.random.normal(k3, (B, N, D), dtype=jnp.float32)

    loss = jax.block_until_ready(
        negative_sampling_loss(input_vectors, output_vectors, neg_vectors))
    ref = negative_sampling_loss_ref(input_vectors, output_vectors, neg_vectors)
    assert jnp.allclose(loss, ref, rtol=1e-5, atol=1e-5), (loss, ref)

    # Ragged batch: exercises the multi-step grid + masked last tile.
    k4, k5, k6 = jax.random.split(jax.random.PRNGKey(1), 3)
    B2 = 20
    iv2 = jax.random.normal(k4, (B2, D), dtype=jnp.float32)
    ov2 = jax.random.normal(k5, (B2, D), dtype=jnp.float32)
    nv2 = jax.random.normal(k6, (B2, N, D), dtype=jnp.float32)
    loss2 = jax.block_until_ready(
        negative_sampling_loss(iv2, ov2, nv2, block_b=8))
    ref2 = negative_sampling_loss_ref(iv2, ov2, nv2)
    assert jnp.allclose(loss2, ref2, rtol=1e-5, atol=1e-5), (loss2, ref2)

    # bf16 inputs in HBM (halves bytes moved); accumulation stays f32 in-kernel.
    loss3 = jax.block_until_ready(
        negative_sampling_loss(input_vectors.astype(jnp.bfloat16),
                               output_vectors.astype(jnp.bfloat16),
                               neg_vectors.astype(jnp.bfloat16)))
    ref3 = negative_sampling_loss_ref(input_vectors.astype(jnp.bfloat16),
                                      output_vectors.astype(jnp.bfloat16),
                                      neg_vectors.astype(jnp.bfloat16))
    assert jnp.allclose(loss3, ref3, rtol=1e-2, atol=1e-2), (loss3, ref3)

    print("KERNEL_OK")
</pallas_src>

<mosaic_0001>
module attributes {stable_mosaic.version = 11 : i64} {
  func.func @kernel(%arg0: i32, %arg1: memref<8x32xf32, #tpu.memory_space<vmem>>, %arg2: memref<8x32xf32, #tpu.memory_space<vmem>>, %arg3: memref<8x5x32xf32, #tpu.memory_space<vmem>>, %arg4: memref<1x1xf32, #tpu.memory_space<vmem>>, %arg5: memref<1x1xf32, #tpu.memory_space<vmem>>) attributes {dimension_semantics = [#tpu.dimension_semantics<arbitrary>], iteration_bounds = array<i64: 1>, scalar_prefetch = 0 : i64, scratch_operands = 1 : i64, tpu.core_type = #tpu.core_type<tc>, window_params = [{transform_indices = @transform_0, window_bounds = array<i64: 8, 32>}, {transform_indices = @transform_1, window_bounds = array<i64: 8, 32>}, {transform_indices = @transform_2, window_bounds = array<i64: 8, 5, 32>}, {pipeline_mode = #tpu.pipeline_mode<synchronous>, transform_indices = @transform_3, window_bounds = array<i64: 1, 1>}]} {
    %c0_i32 = arith.constant 0 : i32
    %0 = arith.cmpi eq, %arg0, %c0_i32 : i32
    %1 = arith.extui %0 : i1 to i32
    %c0_i32_0 = arith.constant 0 : i32
    %2 = arith.cmpi ne, %1, %c0_i32_0 : i32
    scf.if %2 {
      %cst_23 = arith.constant 0.000000e+00 : f32
      %53 = vector.broadcast %cst_23 : f32 to vector<1x1xf32>
      %c0_24 = arith.constant 0 : index
      %c0_25 = arith.constant 0 : index
      %54 = vector.load %arg5[%c0_24, %c0_25] : memref<1x1xf32, #tpu.memory_space<vmem>>, vector<1x1xf32>
      tpu.vector_store %arg5[%c0_24, %c0_25], %53 {strides = array<i32>} : memref<1x1xf32, #tpu.memory_space<vmem>>, vector<1x1xf32>,
    } else {
    }
    %c0 = arith.constant 0 : index
    %c0_1 = arith.constant 0 : index
    %3 = vector.load %arg1[%c0, %c0_1] : memref<8x32xf32, #tpu.memory_space<vmem>>, vector<8x32xf32>
    %c0_2 = arith.constant 0 : index
    %c0_3 = arith.constant 0 : index
    %4 = vector.load %arg2[%c0_2, %c0_3] : memref<8x32xf32, #tpu.memory_space<vmem>>, vector<8x32xf32>
    %c0_4 = arith.constant 0 : index
    %c0_5 = arith.constant 0 : index
    %c0_6 = arith.constant 0 : index
    %5 = vector.load %arg3[%c0_4, %c0_5, %c0_6] : memref<8x5x32xf32, #tpu.memory_space<vmem>>, vector<8x5x32xf32>
    %6 = arith.mulf %4, %3 : vector<8x32xf32>
    %cst = arith.constant dense<0.000000e+00> : vector<8xf32>
    %7 = vector.multi_reduction <add>, %6, %cst [1] : vector<8x32xf32> to vector<8xf32>
    %8 = vector.shape_cast %7 : vector<8xf32> to vector<8x1xf32>
    %cst_7 = arith.constant 0.000000e+00 : f32
    %9 = vector.broadcast %cst_7 : f32 to vector<8x1xf32>
    %10 = arith.minimumf %8, %9 : vector<8x1xf32>
    %11 = math.absf %8 : vector<8x1xf32>
    %cst_8 = arith.constant 0.000000e+00 : f32
    %12 = vector.broadcast %cst_8 : f32 to vector<8x1xf32>
    %13 = arith.subf %12, %11 : vector<8x1xf32>
    %14 = math.exp %13 : vector<8x1xf32>
    %15 = math.log1p %14 : vector<8x1xf32>
    %16 = arith.subf %10, %15 : vector<8x1xf32>
    %17 = vector.shape_cast %3 : vector<8x32xf32> to vector<8x1x32xf32>
    %18 = vector.broadcast %17 : vector<8x1x32xf32> to vector<8x5x32xf32>
    %19 = arith.mulf %5, %18 : vector<8x5x32xf32>
    %cst_9 = arith.constant dense<0.000000e+00> : vector<8x5xf32>
    %20 = vector.multi_reduction <add>, %19, %cst_9 [2] : vector<8x5x32xf32> to vector<8x5xf32>
    %cst_10 = arith.constant 0.000000e+00 : f32
    %21 = vector.broadcast %cst_10 : f32 to vector<8x5xf32>
    %22 = arith.subf %21, %20 : vector<8x5xf32>
    %cst_11 = arith.constant 0.000000e+00 : f32
    %23 = vector.broadcast %cst_11 : f32 to vector<8x5xf32>
    %24 = arith.minimumf %22, %23 : vector<8x5xf32>
    %25 = math.absf %22 : vector<8x5xf32>
    %cst_12 = arith.constant 0.000000e+00 : f32
    %26 = vector.broadcast %cst_12 : f32 to vector<8x5xf32>
    %27 = arith.subf %26, %25 : vector<8x5xf32>
    %28 = math.exp %27 : vector<8x5xf32>
    %29 = math.log1p %28 : vector<8x5xf32>
    %30 = arith.subf %24, %29 : vector<8x5xf32>
    %cst_13 = arith.constant dense<0.000000e+00> : vector<8xf32>
    %31 = vector.multi_reduction <add>, %30, %cst_13 [1] : vector<8x5xf32> to vector<8xf32>
    %32 = vector.shape_cast %31 : vector<8xf32> to vector<8x1xf32>
    %33 = arith.addf %16, %32 : vector<8x1xf32>
    %c8_i32 = arith.constant 8 : i32
    %34 = arith.muli %arg0, %c8_i32 : i32
    %35 = tpu.iota {dimensions = array<i32: 0>} : vector<8x1xi32>
    %36 = vector.broadcast %34 : i32 to vector<8x1xi32>
    %37 = arith.addi %36, %35 : vector<8x1xi32>
    %c8_i32_14 = arith.constant 8 : i32
    %38 = vector.broadcast %c8_i32_14 : i32 to vector<8x1xi32>
    %39 = arith.cmpi slt, %37, %38 : vector<8x1xi32>
    %cst_15 = arith.constant 0.000000e+00 : f32
    %40 = vector.broadcast %cst_15 : f32 to vector<8x1xf32>
    %41 = arith.select %39, %33, %40 : vector<8x1xi1>, vector<8x1xf32>
    %c0_16 = arith.constant 0 : index
    %c0_17 = arith.constant 0 : index
    %42 = vector.load %arg5[%c0_16, %c0_17] : memref<1x1xf32, #tpu.memory_space<vmem>>, vector<1x1xf32>
    %43 = vector.shape_cast %41 : vector<8x1xf32> to vector<1x8x1xf32>
    %cst_18 = arith.constant dense<0.000000e+00> : vector<1xf32>
    %44 = vector.multi_reduction <add>, %43, %cst_18 [1, 2] : vector<1x8x1xf32> to vector<1xf32>
    %45 = vector.shape_cast %44 : vector<1xf32> to vector<1x1x1xf32>
    %46 = vector.extract %45[0, 0, 0] : f32 from vector<1x1x1xf32>
    %47 = vector.broadcast %46 : f32 to vector<1x1xf32>
    %48 = arith.addf %42, %47 : vector<1x1xf32>
    %c0_19 = arith.constant 0 : index
    %c0_20 = arith.constant 0 : index
    %49 = vector.load %arg5[%c0_19, %c0_20] : memref<1x1xf32, #tpu.memory_space<vmem>>, vector<1x1xf32>
    tpu.vector_store %arg5[%c0_19, %c0_20], %48 {strides = array<i32>} : memref<1x1xf32, #tpu.memory_space<vmem>>, vector<1x1xf32>,
    %c0_i32_21 = arith.constant 0 : i32
    %50 = arith.cmpi eq, %arg0, %c0_i32_21 : i32
    %51 = arith.extui %50 : i1 to i32
    %c0_i32_22 = arith.constant 0 : i32
    %52 = arith.cmpi ne, %51, %c0_i32_22 : i32
    scf.if %52 {
      %c0_23 = arith.constant 0 : index
      %c0_24 = arith.constant 0 : index
      %53 = vector.load %arg5[%c0_23, %c0_24] : memref<1x1xf32, #tpu.memory_space<vmem>>, vector<1x1xf32>
      %cst_25 = arith.constant 0.000000e+00 : f32
      %54 = vector.broadcast %cst_25 : f32 to vector<1x1xf32>
      %55 = arith.subf %54, %53 : vector<1x1xf32>
      %cst_26 = arith.constant 8.000000e+00 : f32
      %56 = vector.broadcast %cst_26 : f32 to vector<1x1xf32>
      %57 = arith.divf %55, %56 : vector<1x1xf32>
      %c0_27 = arith.constant 0 : index
      %c0_28 = arith.constant 0 : index
      %58 = vector.load %arg4[%c0_27, %c0_28] : memref<1x1xf32, #tpu.memory_space<vmem>>, vector<1x1xf32>
      tpu.vector_store %arg4[%c0_27, %c0_28], %57 {strides = array<i32>} : memref<1x1xf32, #tpu.memory_space<vmem>>, vector<1x1xf32>,
    } else {
    }
    return
  }
  func.func @transform_0(%arg0: i32) -> (i32, i32) {
    %c0_i32 = arith.constant 0 : i32
    %c0_i32_0 = arith.constant 0 : i32
    return %arg0, %c0_i32 : i32, i32
  }
  func.func @transform_1(%arg0: i32) -> (i32, i32) {
    %c0_i32 = arith.constant 0 : i32
    %c0_i32_0 = arith.constant 0 : i32
    return %arg0, %c0_i32 : i32, i32
  }
  func.func @transform_2(%arg0: i32) -> (i32, i32, i32) {
    %c0_i32 = arith.constant 0 : i32
    %c0_i32_0 = arith.constant 0 : i32
    %c0_i32_1 = arith.constant 0 : i32
    return %arg0, %c0_i32, %c0_i32_0 : i32, i32, i32
  }
  func.func @transform_3(%arg0: i32) -> (i32, i32) {
    %c0_i32 = arith.constant 0 : i32
    %c0_i32_0 = arith.constant 0 : i32
    %c0_i32_1 = arith.constant 0 : i32
    return %c0_i32, %c0_i32_0 : i32, i32
  }
}

</mosaic_0001>

<bundles_post_ra>
// kernel: tpu_custom_call.1
= control target key start
LH: loop header
LB: loop body
LE: loop exit
PB: predicated region body
PF: predicated region fallthrough
CT: control target
= control target key end

     0   :  { %vm83_vm0 = vcmask 258048   ;;  %s558_s0 = inlined_call_operand.vmem [shape: f32[8,32], index: 0, kind: input, shape index: {}]   ;;  %s559_s1 = inlined_call_operand.vmem [shape: f32[8,32], index: 1, kind: input, shape index: {}]   ;;  %s560_s2 = inlined_call_operand.vmem [shape: f32[8,5,32], index: 2, kind: input, shape index: {}]   ;;  %s561_s3 = inlined_call_operand.hbm [shape: f32[1,1], index: 3, kind: output, shape index: {}]  }
   0x1   :  { %v21_v0 = vld [vmem:[%s558_s0] sm:$0xff]  ;;  %v25_v7 = vld [vmem:[%s560_s2 + $0x10] sm:$0x1f]  ;;  %v24_v14 = vld [vmem:[%s560_s2 + $0x8] sm:$0x1f] }
   0x2   :  { %v23_v1 = vld [vmem:[%s560_s2] sm:$0x1f]  ;;  %v59_v2 = vperm.slane %v21_v0, 0  ;;  %v55_v3 = vrot.slane %v21_v0, 4  ;;  %v53_v4 = vrot.slane %v21_v0, 2  ;;  %v52_v5 = vrot.slane %v21_v0, 1 }
   0x3   :  { %v27_v6 = vld [vmem:[%s560_s2 + $0x20] sm:$0x1f]  ;;  %v56_v8 = vrot.slane %v21_v0, 5  ;;  %v54_v9 = vrot.slane %v21_v0, 3 }
   0x4   :  { %v75_v10 = vmul.f32 %v59_v2, %v23_v1  ;;  %v63_v11 = vperm.slane %v55_v3, 0  ;;  %v61_v12 = vperm.slane %v53_v4, 0  ;;  %v60_v13 = vperm.slane %v52_v5, 0 }
   0x5   :  { %v64_v15 = vperm.slane %v56_v8, 0  ;;  %v62_v19 = vperm.slane %v54_v9, 0 }
   0x6   :  { %v84_v16 = vsel %vm83_vm0, %v75_v10, 0.0  ;;  %v79_v17 = vmul.f32 %v63_v11, %v27_v6  ;;  %v77_v18 = vmul.f32 %v61_v12, %v25_v7 }
   0x7   :  { %8 = vsyncpa [#allocation4], 0  ;;  %85 = vadd.xlane.f32.xlu0 %v84_v16  ;;  %v28_v20 = vld [vmem:[%s560_s2 + $0x28] sm:$0x1f]  ;;  %v26_v21 = vld [vmem:[%s560_s2 + $0x18] sm:$0x1f]  ;;  %v76_v24 = vmul.f32 %v60_v13, %v24_v14 }
   0x8   :  { %v96_v22 = vsel %vm83_vm0, %v79_v17, 0.0  ;;  %v90_v23 = vsel %vm83_vm0, %v77_v18, 0.0  ;;  %v57_v25 = vrot.slane %v21_v0, 6  ;;  %v80_v26 = vmul.f32 %v64_v15, %v28_v20  ;;  %v29_v31 = vld [vmem:[%s560_s2 + $0x30] sm:$0x1f]  ;;  %v22_v40 = vld [vmem:[%s559_s1] sm:$0xff] }
   0x9   :  { %97 = vadd.xlane.f32.xlu2 %v96_v22  ;;  %91 = vadd.xlane.f32.xlu1 %v90_v23  ;;  %v78_v27 = vmul.f32 %v62_v19, %v26_v21  ;;  %v58_v28 = vrot.slane %v21_v0, 7  ;;  %v87_v29 = vsel %vm83_vm0, %v76_v24, 0.0  ;;  %v30_v35 = vld [vmem:[%s560_s2 + $0x38] sm:$0x1f]  ;;  %v31_v41 = vmul.f32 %v22_v40, %v21_v0  ;;  %s398_s2 = smov [#allocation3]   ;;  %s318_s7 = sshll.u32 %s561_s3, 4  ;;  %s319_s7 = int_to_ptr.hbm [resolvable:$true] %s318_s7 }
   0xa   :  { %v65_v30 = vperm.slane %v57_v25, 0  ;;  %v99_v32 = vsel %vm83_vm0, %v80_v26, 0.0  ;;  %vm32_vm1 = vcmask 261120   ;;  %v244_v17 = vlaneseq  ;;  %s316_s4 = sshll.u32 %s398_s2, 4  ;;  %s317_s4 = int_to_ptr.vmem [resolvable:$true] %s316_s4 }
   0xb   :  { %v93_v33 = vsel %vm83_vm0, %v78_v27, 0.0  ;;  %v66_v34 = vperm.slane %v58_v28, 0  ;;  %v33_v42 = vsel %vm32_vm1, %v31_v41, 0.0  ;;  %vm254_vm3 = vcmask 1041409  }
   0xc   :  { %v81_v36 = vmul.f32 %v65_v30, %v29_v31  ;;  %v498_v31 = vand.u32 127, %v244_v17  ;;  %vm256_vm7 = vcmask 1042434   ;;  %vm258_vm9 = vcmask 1043459  }
   0xd   :  { %v82_v37 = vmul.f32 %v66_v34, %v30_v35  ;;  %vm260_vm12 = vcmask 1044484   ;;  %vm262_vm13 = vcmask 1045509   ;;  %vm264_vm15 = vcmask 1046534  }
   0xe   :  { %v102_v38 = vsel %vm83_vm0, %v81_v36, 0.0  ;;  %vm269_vm1 = vcmask 39936  }
   0xf   :  { %88 = vadd.xlane.f32.xlu0 %v87_v29  ;;  %v105_v39 = vsel %vm83_vm0, %v82_v37, 0.0  ;;  %vm266_vm0 = vcmask 1047559  }
  0x11   :  { %100 = vadd.xlane.f32.xlu2 %v99_v32  ;;  %94 = vadd.xlane.f32.xlu1 %v93_v33 }
  0x17   :  { %103 = vadd.xlane.f32.xlu0 %v102_v38 }
  0x19   :  { %106 = vadd.xlane.f32.xlu1 %v105_v39  ;;  %34 = vadd.xlane.f32.xlu2 %v33_v42 }
  0x7a   :  { %v457_v43 = vpop.xlane.xlu0 %85 }
  0x7b   :  { %v108_v44 = vsub.f32 0.0, %v457_v43 }
  0x7c   :  { %v460_v45 = vpop.xlane.xlu2 %97  ;;  %v462_v46 = vpop.xlane.xlu1 %91 }
  0x7d   :  { %v124_v47 = vand.u32 2147483647, %v108_v44  ;;  %v112_v48 = vsub.f32 0.0, %v460_v45  ;;  %v110_v49 = vsub.f32 0.0, %v462_v46  ;;  %v116_v35 = vmin.f32 %v108_v44, 0.0 }
  0x7f   :  { %v132_v50 = vsub.f32 0.0, %v124_v47  ;;  %v128_v51 = vand.u32 2147483647, %v112_v48  ;;  %v126_v52 = vand.u32 2147483647, %v110_v49 }
  0x81   :  { %v140_v53 = vmul.f32 1.442695, %v132_v50  ;;  %v136_v54 = vsub.f32 0.0, %v128_v51  ;;  %v134_v55 = vsub.f32 0.0, %v126_v52 }
  0x82   :  { %v472_v56 = vpop.xlane.xlu0 %88 }
  0x83   :  { %332 = vpow2.f32 %v140_v53  ;;  %v109_v57 = vsub.f32 0.0, %v472_v56  ;;  %v148_v58 = vmul.f32 1.442695, %v136_v54  ;;  %v144_v59 = vmul.f32 1.442695, %v134_v55 }
  0x84   :  { %v475_v60 = vpop.xlane.xlu2 %100  ;;  %v477_v61 = vpop.xlane.xlu1 %94 }
  0x85   :  { %v125_v62 = vand.u32 2147483647, %v109_v57  ;;  %v113_v63 = vsub.f32 0.0, %v475_v60  ;;  %334 = vpow2.f32 %v144_v59  ;;  %v111_v0 = vsub.f32 0.0, %v477_v61 }
  0x86   :  { %336 = vpow2.f32 %v148_v58  ;;  %v117_v50 = vmin.f32 %v109_v57, 0.0 }
  0x87   :  { %v133_v1 = vsub.f32 0.0, %v125_v62  ;;  %v129_v2 = vand.u32 2147483647, %v113_v63  ;;  %v127_v3 = vand.u32 2147483647, %v111_v0 }
  0x89   :  { %v333_v4 = vpop.eup %332  ;;  %v142_v5 = vmul.f32 1.442695, %v133_v1  ;;  %v137_v6 = vsub.f32 0.0, %v129_v2  ;;  %v135_v8 = vsub.f32 0.0, %v127_v3 }
  0x8a   :  { %v156_v7 = vadd.f32 1.0, %v333_v4  ;;  %v485_v9 = vpop.xlane.xlu0 %103  ;;  %v159_v20 = vmul.f32 -0.5, %v333_v4  ;;  %v162_v33 = vand.u32 2147483647, %v333_v4 }
  0x8b   :  { %338 = vpow2.f32 %v142_v5  ;;  %v335_v10 = vpop.eup %334  ;;  %v150_v11 = vmul.f32 1.442695, %v137_v6  ;;  %v114_v12 = vsub.f32 0.0, %v485_v9  ;;  %v146_v15 = vmul.f32 1.442695, %v135_v8 }
  0x8c   :  { %v174_v13 = vadd.f32 1.0, %v335_v10  ;;  %v488_v14 = vpop.eup %336  ;;  %340 = vlog2.f32 %v156_v7  ;;  %v490_v16 = vpop.xlane.xlu1 %106  ;;  %v177_v23 = vmul.f32 -0.5, %v335_v10  ;;  %v160_v32 = vadd.f32 1.0, %v159_v20 }
  0x8d   :  { %v130_v18 = vand.u32 2147483647, %v114_v12  ;;  %v192_v21 = vadd.f32 1.0, %v488_v14  ;;  %v115_v22 = vsub.f32 0.0, %v490_v16  ;;  %v195_v36 = vmul.f32 -0.5, %v488_v14 }
  0x8e   :  { %342 = vlog2.f32 %v174_v13  ;;  %v178_v37 = vadd.f32 1.0, %v177_v23  ;;  %v180_v39 = vand.u32 2147483647, %v335_v10  ;;  %v161_v53 = vmul.f32 %v333_v4, %v160_v32 }
  0x8f   :  { %344 = vpow2.f32 %v150_v11  ;;  %v138_v25 = vsub.f32 0.0, %v130_v18  ;;  %v131_v27 = vand.u32 2147483647, %v115_v22  ;;  %vm506_vm2 = vcmp.lt.f32.partialorder %v162_v33, 0.0004427343 }
  0x90   :  { %346 = vpow2.f32 %v146_v15  ;;  %v198_v43 = vand.u32 2147483647, %v488_v14  ;;  %v196_v56 = vadd.f32 1.0, %v195_v36  ;;  %v179_v58 = vmul.f32 %v335_v10, %v178_v37 }
  0x91   :  { %v339_v19 = vpop.eup %338  ;;  %v152_v29 = vmul.f32 1.442695, %v138_v25  ;;  %v139_v42 = vsub.f32 0.0, %v131_v27  ;;  %vm513_vm4 = vcmp.lt.f32.partialorder %v180_v39, 0.0004427343  ;;  %v118_v20 = vmin.f32 %v110_v49, 0.0 }
  0x92   :  { %v165_v24 = vadd.f32 1.0, %v339_v19  ;;  %v168_v26 = vmul.f32 -0.5, %v339_v19  ;;  %v341_v28 = vpop.eup %340  ;;  %v171_v51 = vand.u32 2147483647, %v339_v19  ;;  %vm524_vm6 = vcmp.lt.f32.partialorder %v198_v43, 0.0004427343 }
  0x93   :  { %v158_v47 = vmul.f32 0.6931472, %v341_v28  ;;  %v154_v57 = vmul.f32 1.442695, %v139_v42  ;;  %v119_v25 = vmin.f32 %v111_v0, 0.0  ;;  %v197_v46 = vmul.f32 %v488_v14, %v196_v56 }
  0x94   :  { %348 = vlog2.f32 %v165_v24  ;;  %v343_v30 = vpop.eup %342  ;;  %v169_v40 = vadd.f32 1.0, %v168_v26  ;;  %vm172_vm5 = vcmp.lt.f32.partialorder %v171_v51, 0.0004427343  ;;  %v122_v37 = vmin.f32 %v114_v12, 0.0 }
  0x95   :  { %350 = vlog2.f32 %v192_v21  ;;  %v500_v34 = vpop.eup %344  ;;  %v176_v44 = vmul.f32 0.6931472, %v343_v30  ;;  %v164_v4 = vsel %vm506_vm2, %v161_v53, %v158_v47  ;;  %v121_v43 = vmin.f32 %v113_v63, 0.0 }
  0x96   :  { %352 = vpow2.f32 %v152_v29  ;;  %v347_v38 = vpop.eup %346  ;;  %v201_v41 = vadd.f32 1.0, %v500_v34  ;;  %v170_v2 = vmul.f32 %v339_v19, %v169_v40  ;;  %v204_v6 = vmul.f32 -0.5, %v500_v34 }
  0x97   :  { %v183_v52 = vadd.f32 1.0, %v347_v38  ;;  %v186_v59 = vmul.f32 -0.5, %v347_v38  ;;  %v182_v7 = vsel %vm513_vm4, %v179_v58, %v176_v44  ;;  %v189_v15 = vand.u32 2147483647, %v347_v38 }
  0x98   :  { %v228_v18 = vsub.f32 %v116_v35, %v164_v4  ;;  %v120_v19 = vmin.f32 %v112_v48, 0.0  ;;  %v230_v27 = vsub.f32 %v118_v20, %v182_v7  ;;  %v205_v49 = vadd.f32 1.0, %v204_v6 }
  0x99   :  { %354 = vlog2.f32 %v183_v52  ;;  %v187_v10 = vadd.f32 1.0, %v186_v59  ;;  %vm190_vm8 = vcmp.lt.f32.partialorder %v189_v15, 0.0004427343  ;;  %v207_v32 = vand.u32 2147483647, %v500_v34 }
  0x9a   :  { %v349_v55 = vpop.eup %348  ;;  %356 = vlog2.f32 %v201_v41  ;;  %v246_v30 = vperm.slane %v228_v18, %v498_v31  ;;  %v206_v42 = vmul.f32 %v500_v34, %v205_v49  ;;  %v123_v60 = vmin.f32 %v115_v22, 0.0 }
  0x9b   :  { %v351_v62 = vpop.eup %350  ;;  %v167_v1 = vmul.f32 0.6931472, %v349_v55  ;;  %358 = vpow2.f32 %v154_v57  ;;  %v188_v48 = vmul.f32 %v347_v38, %v187_v10  ;;  %v248_v38 = vperm.slane %v230_v27, %v498_v31 }
  0x9c   :  { %v353_v3 = vpop.eup %352  ;;  %v194_v23 = vmul.f32 0.6931472, %v351_v62  ;;  %vm208_vm10 = vcmp.lt.f32.partialorder %v207_v32, 0.0004427343  ;;  %vm19_vm4 = vcmask 0  }
  0x9d   :  { %v173_v8 = vsel %vm172_vm5, %v170_v2, %v167_v1  ;;  %v210_v11 = vadd.f32 1.0, %v353_v3  ;;  %v213_v17 = vmul.f32 -0.5, %v353_v3  ;;  %v216_v35 = vand.u32 2147483647, %v353_v3 }
  0x9e   :  { %v229_v13 = vsub.f32 %v117_v50, %v173_v8  ;;  %v200_v14 = vsel %vm524_vm6, %v197_v46, %v194_v23  ;;  %v396_v46 = vmov 0.0  }
  0x9f   :  { %360 = vlog2.f32 %v210_v11  ;;  %v355_v21 = vpop.eup %354  ;;  %v214_v29 = vadd.f32 1.0, %v213_v17  ;;  %vm217_vm11 = vcmp.lt.f32.partialorder %v216_v35, 0.0004427343  ;;  %v232_v9 = vsub.f32 %v120_v19, %v200_v14  ;;  %20 = vst.msk [vmem:[#allocation2] sm:$0x1] %vm19_vm4, %v396_v46 }
  0xa0   :  { %v357_v26 = vpop.eup %356  ;;  %v247_v28 = vperm.slane %v229_v13, %v498_v31  ;;  %v185_v45 = vmul.f32 0.6931472, %v355_v21  ;;  %v35_v13 = vpop.xlane.xlu2 %34 }
  0xa1   :  { %v359_v61 = vpop.eup %358  ;;  %v203_v0 = vmul.f32 0.6931472, %v357_v26  ;;  %v215_v50 = vmul.f32 %v353_v3, %v214_v29  ;;  %v250_v59 = vperm.slane %v232_v9, %v498_v31  ;;  %v37_v15 = vand.u32 2147483647, %v35_v13 }
  0xa2   :  { %v191_v33 = vsel %vm190_vm8, %v188_v48, %v185_v45  ;;  %v255_v40 = vsel %vm254_vm3, %v247_v28, %v246_v30  ;;  %v219_v41 = vadd.f32 1.0, %v359_v61  ;;  %v222_v51 = vmul.f32 -0.5, %v359_v61 }
  0xa3   :  { %v231_v36 = vsub.f32 %v119_v25, %v191_v33  ;;  %v209_v12 = vsel %vm208_vm10, %v206_v42, %v203_v0  ;;  %v257_v54 = vsel %vm256_vm7, %v248_v38, %v255_v40  ;;  %v225_v34 = vand.u32 2147483647, %v359_v61 }
  0xa4   :  { %362 = vlog2.f32 %v219_v41  ;;  %v223_v55 = vadd.f32 1.0, %v222_v51  ;;  %v233_v56 = vsub.f32 %v121_v43, %v209_v12  ;;  %v38_v17 = vsub.f32 0.0, %v37_v15 }
  0xa5   :  { %v361_v39 = vpop.eup %360  ;;  %v249_v52 = vperm.slane %v231_v36, %v498_v31  ;;  %vm226_vm14 = vcmp.lt.f32.partialorder %v225_v34, 0.0004427343  ;;  %vm282_vm3 = vcmask 7168   ;;  %v397_v0 = vmov 8.0  }
  0xa6   :  { %v212_v47 = vmul.f32 0.6931472, %v361_v39  ;;  %v224_v57 = vmul.f32 %v359_v61, %v223_v55  ;;  %v251_v4 = vperm.slane %v233_v56, %v498_v31  ;;  %v39_v18 = vmul.f32 1.442695, %v38_v17  ;;  %v281_v39 = vld [vmem:[#allocation2] sm:$0x1] }
  0xa7   :  { %v259_v58 = vsel %vm258_vm9, %v249_v52, %v257_v54 }
  0xa8   :  { %v218_v53 = vsel %vm217_vm11, %v215_v50, %v212_v47  ;;  %v261_v3 = vsel %vm260_vm12, %v250_v59, %v259_v58  ;;  %364 = vpow2.f32 %v39_v18 }
  0xa9   :  { %v234_v44 = vsub.f32 %v122_v37, %v218_v53  ;;  %v263_v6 = vsel %vm262_vm13, %v251_v4, %v261_v3 }
  0xaa   :  { %v363_v62 = vpop.eup %362 }
  0xab   :  { %v252_v1 = vperm.slane %v234_v44, %v498_v31  ;;  %v221_v2 = vmul.f32 0.6931472, %v363_v62 }
  0xad   :  { %v227_v63 = vsel %vm226_vm14, %v224_v57, %v221_v2  ;;  %v265_v7 = vsel %vm264_vm15, %v252_v1, %v263_v6 }
  0xae   :  { %v235_v5 = vsub.f32 %v123_v60, %v227_v63  ;;  %v365_v16 = vpop.eup %364 }
  0xaf   :  { %v41_v22 = vadd.f32 1.0, %v365_v16  ;;  %v44_v19 = vmul.f32 -0.5, %v365_v16  ;;  %v47_v23 = vand.u32 2147483647, %v365_v16 }
  0xb0   :  { %v253_v8 = vperm.slane %v235_v5, %v498_v31  ;;  %v36_v31 = vmin.f32 %v35_v13, 0.0 }
  0xb1   :  { %366 = vlog2.f32 %v41_v22  ;;  %v45_v20 = vadd.f32 1.0, %v44_v19  ;;  %vm48_vm2 = vcmp.lt.f32.partialorder %v47_v23, 0.0004427343 }
  0xb2   :  { %v267_v10 = vsel %vm266_vm0, %v253_v8, %v265_v7  ;;  %368 = vrcp.f32 %v397_v0 }
  0xb3   :  { %v270_v11 = vsel %vm269_vm1, %v267_v10, 0.0  ;;  %v46_v25 = vmul.f32 %v365_v16, %v45_v20 }
  0xb4   :  { %271 = vadd.xlane.f32.xlu0 %v270_v11 }
  0xb7   :  { %v367_v21 = vpop.eup %366 }
  0xb8   :  { %v43_v24 = vmul.f32 0.6931472, %v367_v21  ;;  %v369_v36 = vpop.eup %368 }
  0xb9   :  { %v303_v37 = vmul.f32 8.0, %v369_v36  ;;  %vm307_vm5 = vweird.f32 %v369_v36 }
  0xba   :  { %v49_v26 = vsel %vm48_vm2, %v46_v25, %v43_v24 }
  0xbb   :  { %v50_v27 = vsub.f32 %v36_v31, %v49_v26  ;;  %v304_v14 = vsub.f32 1.0, %v303_v37 }
  0xbd   :  { %v305_v41 = vmul.f32 %v369_v36, %v304_v14 }
  0xbf   :  { %v306_v42 = vadd.f32 %v369_v36, %v305_v41 }
  0xc1   :  { %v308_v50 = vsel %vm307_vm5, %v369_v36, %v306_v42 }
 0x127   :  { %v272_v28 = vpop.xlane.xlu0 %271 }
 0x128   :  { %v273_v45 = vadd.f32 %v272_v28, %v50_v27 }
 0x12a   :  { %v283_v48 = vsel %vm282_vm3, %v273_v45, 0.0 }
 0x12b   :  { %284 = vadd.xlane.f32.xlu1 %v283_v48 }
 0x19e   :  { %v285_v49 = vpop.xlane.xlu1 %284 }
 0x19f   :  { %v286_v29 = vrot.slane %v285_v49, 4 }
 0x1a1   :  { %v287_v30 = vadd.f32 %v286_v29, %v285_v49 }
 0x1a3   :  { %v288_v32 = vrot.slane %v287_v30, 2 }
 0x1a5   :  { %v289_v33 = vadd.f32 %v288_v32, %v287_v30 }
 0x1a7   :  { %v290_v35 = vrot.slane %v289_v33, 1 }
 0x1a9   :  { %v291_v61 = vadd.f32 %v290_v35, %v289_v33 }
 0x1ab   :  { %327 = vpush %v291_v61 }
 0x1dc   :  { %s328_s1 = spop %327 }
 0x1dd   :  { %v293_v38 = vstv %s328_s1 }
 0x1de   :  { %v294_v40 = vadd.f32 %v293_v38, %v281_v39 }
 0x1e0   :  { %296 = vst.msk [vmem:[#allocation2] sm:$0x1] %vm19_vm4, %v294_v40 }
 0x1e7   :  { %v300_v47 = vld [vmem:[#allocation2] sm:$0x1] }
 0x1e8   :  { %v301_v51 = vsub.f32 0.0, %v300_v47 }
 0x1ea   :  { %v309_v52 = vmul.f32 %v308_v50, %v301_v51 }
 0x1ec   :  { %310 = vst.msk [vmem:[#allocation3] sm:$0x1] %vm19_vm4, %v309_v52 }
 0x1ed   :  { %321 = dma.vmem_to_hbm [thread:$0]  %s317_s4, 16, %s319_s7, [#allocation4]  }
 0x1ee   :  { %394 = dma.done.wait [#allocation4], 16  }
 0x1ef   :  { %395 = vsyncadd [#allocation4], 4294967280 }
 0x1f0   :  { %326 = vsyncpa [#allocation4], 1 }

</bundles_post_ra>
